<compile_context>
chip_gen: v7x
topology: tpu7x:2x2x1
jax: 0.10.0
libtpu: 0.0.40
codegen_flags: <defaults>
</compile_context>

<pallas_src>
import jax
import jax.numpy as jnp
from jax.experimental import pallas as pl
from jax.experimental.pallas import tpu as pltpu

LANE = 128            # padded feature width (lanes)
NUM_LAYERS = 5
MAX_BATCH_TILE = 2048  # cap on rows per grid step (VMEM use stays ~a few MiB)
MIN_SPLIT_ROWS = 1024  # batches above this get >= 2 grid steps (v7x megacore)


def _round_up(x, m):
    return -(-x // m) * m


def _mlp_kernel(x_ref, w_ref, b_ref, out_ref):
    """Fused 5-layer MLP on one (tile, D) batch block.

    x_ref:   (tile, D)        unpadded input activations, f32
    w_ref:   (5, 128, 128)    zero-padded weights, bf16, layer-major
    b_ref:   (8, 128)         zero-padded biases, f32 (rows 0..4 used)
    out_ref: (tile, 128)      padded output, f32 (real data in [:, :E])
    """
    d_in = x_ref.shape[1]
    b = b_ref[...]                                   # (8, 128) f32, read once

    # Layer 1: contract only over the real input width (K = d_in).  The
    # sublane slice of the layer-0 weight tile starts at 0 -> aligned & free.
    h = jnp.dot(x_ref[...].astype(jnp.bfloat16),
                w_ref[0][:d_in, :],
                preferred_element_type=jnp.float32)
    h = jnp.maximum(h + b[0], 0.0)

    # Layers 2-4: Linear + ReLU (static unroll; K = N = 128, lane-aligned).
    for i in range(1, NUM_LAYERS - 1):
        h = jnp.dot(h.astype(jnp.bfloat16), w_ref[i],
                    preferred_element_type=jnp.float32)
        h = jnp.maximum(h + b[i], 0.0)

    # Layer 5: final Linear, no ReLU.
    h = jnp.dot(h.astype(jnp.bfloat16), w_ref[NUM_LAYERS - 1],
                preferred_element_type=jnp.float32)
    out_ref[...] = (h + b[NUM_LAYERS - 1]).astype(out_ref.dtype)


def pack_params(params):
    """Pack the 5 (W, b) pairs into lane-padded slabs.

    Returns:
      w_slab: (5, 128, 128) bf16 — each layer's (in, out) weight in the
              top-left corner, zeros elsewhere (inert through the network).
      b_slab: (8, 128) f32 — row i = layer-i bias zero-padded to 128 lanes.
    """
    w_slab = jnp.zeros((NUM_LAYERS, LANE, LANE), jnp.float32)
    b_slab = jnp.zeros((8, LANE), jnp.float32)       # 8 rows -> (8,128) tile
    for i, (w, b) in enumerate(params):
        fan_in, fan_out = w.shape
        assert fan_in <= LANE and fan_out <= LANE
        w_slab = w_slab.at[i, :fan_in, :fan_out].set(w.astype(jnp.float32))
        b_slab = b_slab.at[i, :fan_out].set(b.reshape(-1).astype(jnp.float32))
    return w_slab.astype(jnp.bfloat16), b_slab


def _choose_tile(batch):
    """Adaptive batch tile: one step for small batches, >=2 big steps otherwise."""
    bp = _round_up(batch, 8)
    if bp <= MIN_SPLIT_ROWS:
        return bp                                    # single latency-optimized step
    n_tiles = max(2, -(-bp // MAX_BATCH_TILE))       # >=2 steps -> both v7x TCs
    return _round_up(-(-bp // n_tiles), 8)


def woz_generator_forward(s_z, w_slab, b_slab, embed_size):
    """Fused MLP forward via a single pallas_call.

    The weight/bias slabs are grid-invariant (constant index_map) so they are
    DMA'd once and stay VMEM-resident across all batch tiles.
    """
    B, D = s_z.shape
    assert D <= LANE
    tile = _choose_tile(B)
    grid_b = pl.cdiv(B, tile)

    out = pl.pallas_call(
        _mlp_kernel,
        out_shape=jax.ShapeDtypeStruct((B, LANE), jnp.float32),
        grid=(grid_b,),
        in_specs=[
            pl.BlockSpec((tile, D), lambda i: (i, 0)),
            # Grid-invariant operands (single logical fetch across all steps).
            pl.BlockSpec((NUM_LAYERS, LANE, LANE), lambda i: (0, 0, 0)),
            pl.BlockSpec((8, LANE), lambda i: (0, 0)),
        ],
        out_specs=pl.BlockSpec((tile, LANE), lambda i: (i, 0)),
        compiler_params=pltpu.CompilerParams(
            dimension_semantics=("parallel",)),
    )(s_z.astype(jnp.float32), w_slab, b_slab)

    # Slice back to the real embed size (padding never leaves the kernel).
    return out[:B, :embed_size]


def init_params(key, state_noise_dim, vae_embed_size):
    """Deterministic synthetic parameters matching the module's layer shapes.

    Weights are (in, out); biases are (1, out).
    """
    dims = [
        (state_noise_dim, state_noise_dim),   # common_model Linear 1
        (state_noise_dim, state_noise_dim),   # common_model Linear 2
        (state_noise_dim, 100),               # state_model Linear 1
        (100, vae_embed_size),                # state_model Linear 2
        (vae_embed_size, vae_embed_size),     # state_model Linear 3
    ]
    params = []
    for (fan_in, fan_out) in dims:
        key, kw, kb = jax.random.split(key, 3)
        bound = 1.0 / jnp.sqrt(fan_in)
        w = jax.random.uniform(kw, (fan_in, fan_out), jnp.float32, -bound, bound)
        b = jax.random.uniform(kb, (1, fan_out), jnp.float32, -bound, bound)
        params.append((w, b))
    return params


def reference_forward(s_z, params):
    """Pure f32 reference matching the PyTorch module."""
    h = s_z
    for idx, (w, b) in enumerate(params):
        h = h @ w + b
        if idx < 4:  # ReLU after all layers except the final Linear
            h = jnp.maximum(h, 0.0)
    return h


if __name__ == "__main__":
    # Shapes consistent with the module: config.state_noise_dim = 64,
    # config.vae_embed_size = 32, batch = 16.
    STATE_NOISE_DIM = 64
    VAE_EMBED_SIZE = 32
    BATCH = 16

    key = jax.random.PRNGKey(0)
    key, k_x = jax.random.split(key)
    s_z = jax.random.normal(k_x, (BATCH, STATE_NOISE_DIM), jnp.float32)

    params = init_params(key, STATE_NOISE_DIM, VAE_EMBED_SIZE)
    w_slab, b_slab = pack_params(params)

    out = woz_generator_forward(s_z, w_slab, b_slab, VAE_EMBED_SIZE)
    out = jax.block_until_ready(out)

    ref = reference_forward(s_z, params)
    assert out.shape == (BATCH, VAE_EMBED_SIZE)
    # bf16 weight/activation inputs with f32 accumulation -> loosened tolerance
    # vs the pure-f32 reference.
    assert jnp.allclose(out, ref, atol=3e-2, rtol=3e-2), "mismatch vs reference"

    print("KERNEL_OK")
</pallas_src>

<mosaic_0001>
module attributes {stable_mosaic.version = 11 : i64} {
  func.func @_mlp_kernel(%arg0: i32, %arg1: memref<16x64xf32, #tpu.memory_space<vmem>>, %arg2: memref<5x128x128xbf16, #tpu.memory_space<vmem>>, %arg3: memref<8x128xf32, #tpu.memory_space<vmem>>, %arg4: memref<16x128xf32, #tpu.memory_space<vmem>>) attributes {dimension_semantics = [#tpu.dimension_semantics<parallel>], iteration_bounds = array<i64: 1>, scalar_prefetch = 0 : i64, scratch_operands = 0 : i64, tpu.core_type = #tpu.core_type<tc>, window_params = [{transform_indices = @transform_0, window_bounds = array<i64: 16, 64>}, {pipeline_mode = #tpu.pipeline_mode<synchronous>, transform_indices = @transform_1, window_bounds = array<i64: 5, 128, 128>}, {pipeline_mode = #tpu.pipeline_mode<synchronous>, transform_indices = @transform_2, window_bounds = array<i64: 8, 128>}, {transform_indices = @transform_3, window_bounds = array<i64: 16, 128>}]} {
    %c0 = arith.constant 0 : index
    %c0_0 = arith.constant 0 : index
    %0 = vector.load %arg3[%c0, %c0_0] : memref<8x128xf32, #tpu.memory_space<vmem>>, vector<8x128xf32>
    %c0_1 = arith.constant 0 : index
    %c0_2 = arith.constant 0 : index
    %1 = vector.load %arg1[%c0_1, %c0_2] : memref<16x64xf32, #tpu.memory_space<vmem>>, vector<16x64xf32>
    %2 = arith.truncf %1 : vector<16x64xf32> to vector<16x64xbf16>
    %c0_3 = arith.constant 0 : index
    %c0_4 = arith.constant 0 : index
    %c0_5 = arith.constant 0 : index
    %3 = vector.load %arg2[%c0_3, %c0_4, %c0_5] : memref<5x128x128xbf16, #tpu.memory_space<vmem>>, vector<1x128x128xbf16>
    %4 = vector.shape_cast %3 : vector<1x128x128xbf16> to vector<128x128xbf16>
    %5 = vector.extract_strided_slice %4 {offsets = [0, 0], sizes = [64, 128], strides = [1, 1]} : vector<128x128xbf16> to vector<64x128xbf16>
    %cst = arith.constant dense<0.000000e+00> : vector<16x128xf32>
    %6 = tpu.matmul %2, %5, %cst {dimension_numbers = #tpu.dot_dimension_numbers<[1], [0], [0], [1], [0, 0, 1, 1], [], []>} : vector<16x64xbf16>, vector<64x128xbf16>, vector<16x128xf32> -> vector<16x128xf32>
    %7 = vector.extract_strided_slice %0 {offsets = [0, 0], sizes = [1, 128], strides = [1, 1]} : vector<8x128xf32> to vector<1x128xf32>
    %8 = vector.shape_cast %7 : vector<1x128xf32> to vector<128xf32>
    %9 = vector.shape_cast %8 : vector<128xf32> to vector<1x128xf32>
    %10 = vector.broadcast %9 : vector<1x128xf32> to vector<16x128xf32>
    %11 = arith.addf %6, %10 : vector<16x128xf32>
    %cst_6 = arith.constant 0.000000e+00 : f32
    %12 = vector.broadcast %cst_6 : f32 to vector<16x128xf32>
    %13 = arith.maximumf %11, %12 : vector<16x128xf32>
    %14 = arith.truncf %13 : vector<16x128xf32> to vector<16x128xbf16>
    %c1 = arith.constant 1 : index
    %c0_7 = arith.constant 0 : index
    %c0_8 = arith.constant 0 : index
    %15 = vector.load %arg2[%c1, %c0_7, %c0_8] : memref<5x128x128xbf16, #tpu.memory_space<vmem>>, vector<1x128x128xbf16>
    %16 = vector.shape_cast %15 : vector<1x128x128xbf16> to vector<128x128xbf16>
    %cst_9 = arith.constant dense<0.000000e+00> : vector<16x128xf32>
    %17 = tpu.matmul %14, %16, %cst_9 {dimension_numbers = #tpu.dot_dimension_numbers<[1], [0], [0], [1], [0, 0, 1, 1], [], []>} : vector<16x128xbf16>, vector<128x128xbf16>, vector<16x128xf32> -> vector<16x128xf32>
    %18 = vector.extract_strided_slice %0 {offsets = [1, 0], sizes = [1, 128], strides = [1, 1]} : vector<8x128xf32> to vector<1x128xf32>
    %19 = vector.shape_cast %18 : vector<1x128xf32> to vector<128xf32>
    %20 = vector.shape_cast %19 : vector<128xf32> to vector<1x128xf32>
    %21 = vector.broadcast %20 : vector<1x128xf32> to vector<16x128xf32>
    %22 = arith.addf %17, %21 : vector<16x128xf32>
    %cst_10 = arith.constant 0.000000e+00 : f32
    %23 = vector.broadcast %cst_10 : f32 to vector<16x128xf32>
    %24 = arith.maximumf %22, %23 : vector<16x128xf32>
    %25 = arith.truncf %24 : vector<16x128xf32> to vector<16x128xbf16>
    %c2 = arith.constant 2 : index
    %c0_11 = arith.constant 0 : index
    %c0_12 = arith.constant 0 : index
    %26 = vector.load %arg2[%c2, %c0_11, %c0_12] : memref<5x128x128xbf16, #tpu.memory_space<vmem>>, vector<1x128x128xbf16>
    %27 = vector.shape_cast %26 : vector<1x128x128xbf16> to vector<128x128xbf16>
    %cst_13 = arith.constant dense<0.000000e+00> : vector<16x128xf32>
    %28 = tpu.matmul %25, %27, %cst_13 {dimension_numbers = #tpu.dot_dimension_numbers<[1], [0], [0], [1], [0, 0, 1, 1], [], []>} : vector<16x128xbf16>, vector<128x128xbf16>, vector<16x128xf32> -> vector<16x128xf32>
    %29 = vector.extract_strided_slice %0 {offsets = [2, 0], sizes = [1, 128], strides = [1, 1]} : vector<8x128xf32> to vector<1x128xf32>
    %30 = vector.shape_cast %29 : vector<1x128xf32> to vector<128xf32>
    %31 = vector.shape_cast %30 : vector<128xf32> to vector<1x128xf32>
    %32 = vector.broadcast %31 : vector<1x128xf32> to vector<16x128xf32>
    %33 = arith.addf %28, %32 : vector<16x128xf32>
    %cst_14 = arith.constant 0.000000e+00 : f32
    %34 = vector.broadcast %cst_14 : f32 to vector<16x128xf32>
    %35 = arith.maximumf %33, %34 : vector<16x128xf32>
    %36 = arith.truncf %35 : vector<16x128xf32> to vector<16x128xbf16>
    %c3 = arith.constant 3 : index
    %c0_15 = arith.constant 0 : index
    %c0_16 = arith.constant 0 : index
    %37 = vector.load %arg2[%c3, %c0_15, %c0_16] : memref<5x128x128xbf16, #tpu.memory_space<vmem>>, vector<1x128x128xbf16>
    %38 = vector.shape_cast %37 : vector<1x128x128xbf16> to vector<128x128xbf16>
    %cst_17 = arith.constant dense<0.000000e+00> : vector<16x128xf32>
    %39 = tpu.matmul %36, %38, %cst_17 {dimension_numbers = #tpu.dot_dimension_numbers<[1], [0], [0], [1], [0, 0, 1, 1], [], []>} : vector<16x128xbf16>, vector<128x128xbf16>, vector<16x128xf32> -> vector<16x128xf32>
    %40 = vector.extract_strided_slice %0 {offsets = [3, 0], sizes = [1, 128], strides = [1, 1]} : vector<8x128xf32> to vector<1x128xf32>
    %41 = vector.shape_cast %40 : vector<1x128xf32> to vector<128xf32>
    %42 = vector.shape_cast %41 : vector<128xf32> to vector<1x128xf32>
    %43 = vector.broadcast %42 : vector<1x128xf32> to vector<16x128xf32>
    %44 = arith.addf %39, %43 : vector<16x128xf32>
    %cst_18 = arith.constant 0.000000e+00 : f32
    %45 = vector.broadcast %cst_18 : f32 to vector<16x128xf32>
    %46 = arith.maximumf %44, %45 : vector<16x128xf32>
    %47 = arith.truncf %46 : vector<16x128xf32> to vector<16x128xbf16>
    %c4 = arith.constant 4 : index
    %c0_19 = arith.constant 0 : index
    %c0_20 = arith.constant 0 : index
    %48 = vector.load %arg2[%c4, %c0_19, %c0_20] : memref<5x128x128xbf16, #tpu.memory_space<vmem>>, vector<1x128x128xbf16>
    %49 = vector.shape_cast %48 : vector<1x128x128xbf16> to vector<128x128xbf16>
    %cst_21 = arith.constant dense<0.000000e+00> : vector<16x128xf32>
    %50 = tpu.matmul %47, %49, %cst_21 {dimension_numbers = #tpu.dot_dimension_numbers<[1], [0], [0], [1], [0, 0, 1, 1], [], []>} : vector<16x128xbf16>, vector<128x128xbf16>, vector<16x128xf32> -> vector<16x128xf32>
    %51 = vector.extract_strided_slice %0 {offsets = [4, 0], sizes = [1, 128], strides = [1, 1]} : vector<8x128xf32> to vector<1x128xf32>
    %52 = vector.shape_cast %51 : vector<1x128xf32> to vector<128xf32>
    %53 = vector.shape_cast %52 : vector<128xf32> to vector<1x128xf32>
    %54 = vector.broadcast %53 : vector<1x128xf32> to vector<16x128xf32>
    %55 = arith.addf %50, %54 : vector<16x128xf32>
    %c0_22 = arith.constant 0 : index
    %c0_23 = arith.constant 0 : index
    %56 = vector.load %arg4[%c0_22, %c0_23] : memref<16x128xf32, #tpu.memory_space<vmem>>, vector<16x128xf32>
    tpu.vector_store %arg4[%c0_22, %c0_23], %55 {strides = array<i32>} : memref<16x128xf32, #tpu.memory_space<vmem>>, vector<16x128xf32>,
    return
  }
  func.func @transform_0(%arg0: i32) -> (i32, i32) {
    %c0_i32 = arith.constant 0 : i32
    %c0_i32_0 = arith.constant 0 : i32
    return %arg0, %c0_i32 : i32, i32
  }
  func.func @transform_1(%arg0: i32) -> (i32, i32, i32) {
    %c0_i32 = arith.constant 0 : i32
    %c0_i32_0 = arith.constant 0 : i32
    %c0_i32_1 = arith.constant 0 : i32
    %c0_i32_2 = arith.constant 0 : i32
    return %c0_i32, %c0_i32_0, %c0_i32_1 : i32, i32, i32
  }
  func.func @transform_2(%arg0: i32) -> (i32, i32) {
    %c0_i32 = arith.constant 0 : i32
    %c0_i32_0 = arith.constant 0 : i32
    %c0_i32_1 = arith.constant 0 : i32
    return %c0_i32, %c0_i32_0 : i32, i32
  }
  func.func @transform_3(%arg0: i32) -> (i32, i32) {
    %c0_i32 = arith.constant 0 : i32
    %c0_i32_0 = arith.constant 0 : i32
    return %arg0, %c0_i32 : i32, i32
  }
}

</mosaic_0001>

<bundles_post_ra>
// kernel: tpu_custom_call.1
= control target key start
LH: loop header
LB: loop body
LE: loop exit
PB: predicated region body
PF: predicated region fallthrough
CT: control target
= control target key end

     0   :  { %8 = vsyncpa [#allocation3], 0  ;;  %s1066_s0 = inlined_call_operand.hbm [shape: f32[16,64], index: 0, kind: input, shape index: {}]   ;;  %s1067_s1 = inlined_call_operand.hbm [shape: bf16[5,128,128], index: 1, kind: input, shape index: {}]   ;;  %s1068_s2 = inlined_call_operand.hbm [shape: f32[8,128], index: 2, kind: input, shape index: {}]   ;;  %s1069_s3 = inlined_call_operand.hbm [shape: f32[16,128], index: 3, kind: output, shape index: {}]  }
   0x1   :  { %9 = vsyncpa [#allocation6], 0 }
   0x2   :  { %10 = vsyncpa [#allocation4], 0  ;;  %s922_s12 = smov [#allocation5]   ;;  %s828_s16 = scalar_lea.hbm %s1067_s1, 5120 }
   0x3   :  { %s28_s13 = sshll.u32 %s922_s12, 4  ;;  %p829_p0 = scmp.ne.s32.totalorder %s1067_s1, %s828_s16  ;;  %s29_s13 = int_to_ptr.vmem [resolvable:$true] %s28_s13 }
   0x4   :  { %p832_p1 = scmp.lt.u32.totalorder %s828_s16, %s1067_s1 }
   0x6   :  { %p834_p2 = pnand %p832_p1, %p829_p0 }
   0x8   :  { %837 = shalt.err (!%p834_p2)
}
   0x9   :  { %s838_s21 = scalar_lea.vmem %s29_s13, 5120  ;;  %p843_p4 = scmp.lt.s32.totalorder %s29_s13, %s29_s13 }
   0xa   :  { %p839_p3 = scmp.ne.s32.totalorder %s29_s13, %s838_s21  ;;  %p844_p5 = scmp.lt.s32.totalorder %s838_s21, %s838_s21 }
   0xc   :  { %p845_p6 = por %p844_p5, %p843_p4 }
   0xe   :  { %p846_p7 = pnand %p845_p6, %p839_p3 }
  0x10   :  { %849 = shalt.err (!%p846_p7)
}
  0x11   :  { %s923_s22 = smov 64   ;;  %s924_s23 = smov 4  }
  0x12   :  { %34 = dma.hbm_to_vmem [thread:$0]  %s1067_s1, 5120, %s29_s13, [#allocation6], %s923_s22, %s923_s22, %s924_s23  }
  0x13   :  { %s925_s26 = smov [#allocation2]   ;;  %s850_s30 = scalar_lea.hbm %s1066_s0, 256 }
  0x14   :  { %s16_s27 = sshll.u32 %s925_s26, 4  ;;  %p851_p8 = scmp.ne.s32.totalorder %s1066_s0, %s850_s30  ;;  %s17_s27 = int_to_ptr.vmem [resolvable:$true] %s16_s27 }
  0x15   :  { %p854_p9 = scmp.lt.u32.totalorder %s850_s30, %s1066_s0 }
  0x17   :  { %p856_p10 = pnand %p854_p9, %p851_p8 }
  0x19   :  { %859 = shalt.err (!%p856_p10)
}
  0x1a   :  { %s860_s8 = scalar_lea.vmem %s17_s27, 256  ;;  %p865_p12 = scmp.lt.s32.totalorder %s17_s27, %s17_s27 }
  0x1b   :  { %p861_p11 = scmp.ne.s32.totalorder %s17_s27, %s860_s8  ;;  %p866_p13 = scmp.lt.s32.totalorder %s860_s8, %s860_s8 }
  0x1d   :  { %p867_p0 = por %p866_p13, %p865_p12 }
  0x1f   :  { %p868_p1 = pnand %p867_p0, %p861_p11 }
  0x21   :  { %871 = shalt.err (!%p868_p1)
}
  0x22   :  { %s926_s1 = smov 128   ;;  %s927_s9 = smov 8  }
  0x23   :  { %22 = dma.hbm_to_vmem [thread:$0]  %s1066_s0, 256, %s17_s27, [#allocation3], %s926_s1, %s926_s1, %s927_s9  }
  0x24   :  { %s928_s12 = smov [#allocation7]   ;;  %s872_s16 = scalar_lea.hbm %s1068_s2, 128 }
  0x25   :  { %s41_s13 = sshll.u32 %s928_s12, 4  ;;  %p873_p2 = scmp.ne.s32.totalorder %s1068_s2, %s872_s16  ;;  %s42_s13 = int_to_ptr.vmem [resolvable:$true] %s41_s13 }
  0x26   :  { %p876_p3 = scmp.lt.u32.totalorder %s872_s16, %s1068_s2 }
  0x28   :  { %p878_p4 = pnand %p876_p3, %p873_p2 }
  0x2a   :  { %881 = shalt.err (!%p878_p4)
}
  0x2b   :  { %s882_s21 = scalar_lea.vmem %s42_s13, 128  ;;  %p887_p6 = scmp.lt.s32.totalorder %s42_s13, %s42_s13 }
  0x2c   :  { %p883_p5 = scmp.ne.s32.totalorder %s42_s13, %s882_s21  ;;  %p888_p7 = scmp.lt.s32.totalorder %s882_s21, %s882_s21 }
  0x2e   :  { %p889_p8 = por %p888_p7, %p887_p6 }
  0x30   :  { %p890_p9 = pnand %p889_p8, %p883_p5 }
  0x32   :  { %893 = shalt.err (!%p890_p9)
}
  0x33   :  { %44 = dma.hbm_to_vmem [thread:$0]  %s1068_s2, 128, %s42_s13, [#allocation6]  }
  0x34   :  { %916 = dma.done.wait [#allocation3], 256  }
  0x35   :  { %917 = vsyncadd [#allocation3], 4294967040 }
  0x36   :  { %918 = dma.done.wait [#allocation6], 5248  }
  0x37   :  { %919 = vsyncadd [#allocation6], 4294962048  ;;  %v929_v0 = vmov 0.0   ;;  %vm930_vm0 = vmmov 0   ;;  %v792_v1 = vld [vmem:[#allocation5] sm:$0xff]   ;;  %v793_v2 = vld [vmem:[#allocation5 + $0x8] sm:$0xff]   ;;  %v67_v22 = vlaneseq }
  0x38   :  { %690 = vmatprep.subr.bf16.mxu0 %v929_v0  ;;  %698 = vmatprep.mubr.msk.bf16.mxu0 %vm930_vm0, %v929_v0  ;;  %v796_v3 = vld [vmem:[#allocation5 + $0x40] sm:$0xff]   ;;  %v794_v4 = vld [vmem:[#allocation5 + $0x10] sm:$0xff]   ;;  %v797_v5 = vld [vmem:[#allocation5 + $0x48] sm:$0xff]   ;;  %vm95_vm1 = vcmask 523264   ;;  %s931_s2 = smov [#allocation8]  }
  0x39   :  { %702 = vmatprep.subr.bf16.mxu1 %v929_v0  ;;  %718 = vmatprep.mubr.msk.bf16.mxu1 %vm930_vm0, %v929_v0  ;;  %v795_v6 = vld [vmem:[#allocation5 + $0x18] sm:$0xff]   ;;  %v56_v7 = vld [vmem:[#allocation2] sm:$0xff]  ;;  %v800_v12 = vld [vmem:[#allocation5 + $0x60] sm:$0xff]   ;;  %v1017_v23 = vshrl.u32 %v67_v22, 7  ;;  %s599_s23 = sshll.u32 %s931_s2, 4  ;;  %s600_s23 = int_to_ptr.vmem [resolvable:$true] %s599_s23 }
  0x3a   :  { %691 = vmatpush3.bf16.msra.mxu0 %v792_v1  ;;  %703 = vmatpush3.bf16.msra.mxu1 %v796_v3  ;;  %v57_v8 = vld [vmem:[#allocation2 + $0x8] sm:$0xff]  ;;  %v798_v9 = vld [vmem:[#allocation5 + $0x50] sm:$0xff]   ;;  %v801_v13 = vld [vmem:[#allocation5 + $0x68] sm:$0xff]   ;;  %s894_s24 = scalar_lea.vmem %s600_s23, 256  ;;  %p899_p11 = scmp.lt.s32.totalorder %s600_s23, %s600_s23 }
  0x3b   :  { %692 = vmatprep.subr.bf16.mxu0 %v929_v0  ;;  %704 = vmatprep.subr.bf16.mxu1 %v929_v0  ;;  %v58_v10 = vpack.c.bf16 %v57_v8, %v56_v7  ;;  %v799_v11 = vld [vmem:[#allocation5 + $0x58] sm:$0xff]   ;;  %v802_v14 = vld [vmem:[#allocation5 + $0x70] sm:$0xff]   ;;  %v804_v16 = vld [vmem:[#allocation5 + $0x80] sm:$0xff]   ;;  %v69_v24 = vsub.s32 0, %v1017_v23  ;;  %v162_v44 = vsub.s32 1, %v1017_v23  ;;  %v275_v63 = vsub.s32 2, %v1017_v23  ;;  %p895_p10 = scmp.ne.s32.totalorder %s600_s23, %s894_s24  ;;  %p900_p12 = scmp.lt.s32.totalorder %s894_s24, %s894_s24 }
  0x3c   :  { %v803_v15 = vld [vmem:[#allocation5 + $0x78] sm:$0xff]   ;;  %v805_v17 = vld [vmem:[#allocation5 + $0x88] sm:$0xff]   ;;  %v806_v18 = vld [vmem:[#allocation5 + $0x90] sm:$0xff]  }
  0x3d   :  { %v807_v19 = vld [vmem:[#allocation5 + $0x98] sm:$0xff]   ;;  %v808_v20 = vld [vmem:[#allocation5 + $0xa0] sm:$0xff]   ;;  %v809_v21 = vld [vmem:[#allocation5 + $0xa8] sm:$0xff]   ;;  %p901_p13 = por %p900_p12, %p899_p11 }
  0x3e   :  { %693 = vmatpush3.bf16.msra.mxu0 %v793_v2  ;;  %705 = vmatpush3.bf16.msra.mxu1 %v797_v5  ;;  %v1020_v25 = vld [vmem:[#allocation7] sm:$0xff]  ;;  %v810_v36 = vld [vmem:[#allocation5 + $0xb0] sm:$0xff]   ;;  %v811_v37 = vld [vmem:[#allocation5 + $0xb8] sm:$0xff]  }
  0x3f   :  { %694 = vmatprep.subr.bf16.mxu0 %v929_v0  ;;  %706 = vmatprep.subr.bf16.mxu1 %v929_v0  ;;  %v70_v26 = vrot.slane %v1020_v25, %v69_v24  ;;  %v812_v38 = vld [vmem:[#allocation5 + $0xc0] sm:$0xff]   ;;  %v813_v39 = vld [vmem:[#allocation5 + $0xc8] sm:$0xff]   ;;  %v814_v40 = vld [vmem:[#allocation5 + $0xd0] sm:$0xff]   ;;  %v163_v45 = vrot.slane %v1020_v25, %v162_v44  ;;  %v276_v1 = vrot.slane %v1020_v25, %v275_v63  ;;  %p902_p0 = pnand %p901_p13, %p895_p10 }
  0x40   :  { %v815_v41 = vld [vmem:[#allocation5 + $0xd8] sm:$0xff]   ;;  %v816_v42 = vld [vmem:[#allocation5 + $0xe0] sm:$0xff]   ;;  %v817_v43 = vld [vmem:[#allocation5 + $0xe8] sm:$0xff]  }
  0x41   :  { %v818_v55 = vld [vmem:[#allocation5 + $0xf0] sm:$0xff]   ;;  %v819_v56 = vld [vmem:[#allocation5 + $0xf8] sm:$0xff]   ;;  %v820_v57 = vld [vmem:[#allocation5 + $0x100] sm:$0xff]  }
  0x42   :  { %695 = vmatpush3.bf16.msra.mxu0 %v794_v4  ;;  %707 = vmatpush3.bf16.msra.mxu1 %v798_v9  ;;  %v821_v58 = vld [vmem:[#allocation5 + $0x108] sm:$0xff]   ;;  %v822_v59 = vld [vmem:[#allocation5 + $0x110] sm:$0xff]   ;;  %v823_v60 = vld [vmem:[#allocation5 + $0x118] sm:$0xff]  }
  0x43   :  { %696 = vmatprep.subr.bf16.mxu0 %v929_v0  ;;  %708 = vmatprep.subr.bf16.mxu1 %v929_v0  ;;  %v824_v61 = vld [vmem:[#allocation5 + $0x120] sm:$0xff]   ;;  %v825_v62 = vld [vmem:[#allocation5 + $0x128] sm:$0xff]  }
  0x46   :  { %697 = vmatpush3.bf16.msra.mxu0 %v795_v6  ;;  %709 = vmatpush3.bf16.msra.mxu1 %v799_v11  ;;  %v826_v11 = vld [vmem:[#allocation5 + $0x130] sm:$0xff]  }
  0x47   :  { %722 = vmatprep.subr.bf16.mxu0 %v929_v0  ;;  %710 = vmatprep.subr.bf16.mxu1 %v929_v0 }
  0x49   :  { %699 = vmatmul.mubr.msk.bf16.vlgmr.msra.gmra.mrb[0].mxu0 %vm95_vm1, %v58_v10 }
  0x4a   :  { %738 = vmatprep.mubr.msk.bf16.mxu0 %vm930_vm0, %v929_v0  ;;  %711 = vmatpush3.bf16.msra.mxu1 %v800_v12  ;;  %v827_v12 = vld [vmem:[#allocation5 + $0x138] sm:$0xff]  }
  0x4b   :  { %712 = vmatprep.subr.bf16.mxu1 %v929_v0  ;;  %723 = vmatpush3.bf16.msra.mxu0 %v804_v16 }
  0x4c   :  { %724 = vmatprep.subr.bf16.mxu0 %v929_v0 }
  0x4e   :  { %713 = vmatpush3.bf16.msra.mxu1 %v801_v13  ;;  %v388_v13 = vsub.s32 3, %v1017_v23 }
  0x4f   :  { %714 = vmatprep.subr.bf16.mxu1 %v929_v0  ;;  %725 = vmatpush3.bf16.msra.mxu0 %v805_v17 }
  0x50   :  { %726 = vmatprep.subr.bf16.mxu0 %v929_v0 }
  0x52   :  { %715 = vmatpush3.bf16.msra.mxu1 %v802_v14  ;;  %v389_v14 = vrot.slane %v1020_v25, %v388_v13 }
  0x53   :  { %716 = vmatprep.subr.bf16.mxu1 %v929_v0  ;;  %727 = vmatpush3.bf16.msra.mxu0 %v806_v18 }
  0x54   :  { %728 = vmatprep.subr.bf16.mxu0 %v929_v0 }
  0x56   :  { %717 = vmatpush3.bf16.msra.mxu1 %v803_v15 }
  0x57   :  { %742 = vmatprep.subr.bf16.mxu1 %v929_v0  ;;  %729 = vmatpush3.bf16.msra.mxu0 %v807_v19 }
  0x58   :  { %730 = vmatprep.subr.bf16.mxu0 %v929_v0 }
  0x5b   :  { %731 = vmatpush3.bf16.msra.mxu0 %v808_v20 }
  0x5c   :  { %732 = vmatprep.subr.bf16.mxu0 %v929_v0 }
  0x5f   :  { %733 = vmatpush3.bf16.msra.mxu0 %v809_v21 }
  0x60   :  { %734 = vmatprep.subr.bf16.mxu0 %v929_v0 }
  0x63   :  { %735 = vmatpush3.bf16.msra.mxu0 %v810_v36 }
  0x64   :  { %736 = vmatprep.subr.bf16.mxu0 %v929_v0 }
  0x67   :  { %737 = vmatpush3.bf16.msra.mxu0 %v811_v37 }
  0x68   :  { %762 = vmatprep.subr.bf16.mxu0 %v929_v0 }
 0x11c   :  { %v133_v27 = vpop.f32.mrb[0].mxu0 }
 0x11d   :  { %v134_v28 = vadd.f32 %v133_v27, %v70_v26  ;;  %v700_v29 = vpop.f32.mrb[1].mxu0 }
 0x11e   :  { %v136_v30 = vpop.f32.mrb[2].mxu0 }
 0x11f   :  { %v137_v31 = vadd.f32 %v136_v30, %v70_v26  ;;  %v701_v32 = vpop.f32.mrb[3].mxu0  ;;  %v140_v33 = vmax.f32 %v134_v28, 0.0  ;;  %v501_v26 = vsub.s32 4, %v1017_v23 }
 0x121   :  { %v141_v34 = vmax.f32 %v137_v31, 0.0 }
 0x123   :  { %v142_v35 = vpack.c.bf16 %v141_v34, %v140_v33 }
 0x125   :  { %719 = vmatmul.mubr.bf16.vlgmr.msra.gmra.mrb[0].mxu1 %v142_v35 }
 0x126   :  { %758 = vmatprep.mubr.msk.bf16.mxu1 %vm930_vm0, %v929_v0  ;;  %743 = vmatpush3.bf16.msra.mxu1 %v812_v38 }
 0x127   :  { %744 = vmatprep.subr.bf16.mxu1 %v929_v0 }
 0x12a   :  { %745 = vmatpush3.bf16.msra.mxu1 %v813_v39 }
 0x12b   :  { %746 = vmatprep.subr.bf16.mxu1 %v929_v0 }
 0x12e   :  { %747 = vmatpush3.bf16.msra.mxu1 %v814_v40 }
 0x12f   :  { %748 = vmatprep.subr.bf16.mxu1 %v929_v0 }
 0x132   :  { %749 = vmatpush3.bf16.msra.mxu1 %v815_v41 }
 0x133   :  { %750 = vmatprep.subr.bf16.mxu1 %v929_v0 }
 0x136   :  { %751 = vmatpush3.bf16.msra.mxu1 %v816_v42 }
 0x137   :  { %752 = vmatprep.subr.bf16.mxu1 %v929_v0 }
 0x13a   :  { %753 = vmatpush3.bf16.msra.mxu1 %v817_v43 }
 0x13b   :  { %754 = vmatprep.subr.bf16.mxu1 %v929_v0 }
 0x13e   :  { %755 = vmatpush3.bf16.msra.mxu1 %v818_v55 }
 0x13f   :  { %756 = vmatprep.subr.bf16.mxu1 %v929_v0 }
 0x142   :  { %757 = vmatpush3.bf16.msra.mxu1 %v819_v56 }
 0x1f8   :  { %v246_v46 = vpop.f32.mrb[0].mxu1 }
 0x1f9   :  { %v247_v47 = vadd.f32 %v246_v46, %v163_v45  ;;  %v720_v48 = vpop.f32.mrb[1].mxu1 }
 0x1fa   :  { %v249_v49 = vpop.f32.mrb[2].mxu1 }
 0x1fb   :  { %v250_v50 = vadd.f32 %v249_v49, %v163_v45  ;;  %v721_v51 = vpop.f32.mrb[3].mxu1  ;;  %v253_v52 = vmax.f32 %v247_v47, 0.0 }
 0x1fd   :  { %v254_v53 = vmax.f32 %v250_v50, 0.0 }
 0x1ff   :  { %v255_v54 = vpack.c.bf16 %v254_v53, %v253_v52 }
 0x201   :  { %739 = vmatmul.mubr.bf16.vlgmr.msra.gmra.mrb[4].mxu0 %v255_v54 }
 0x202   :  { %778 = vmatprep.mubr.msk.bf16.mxu0 %vm930_vm0, %v929_v0  ;;  %763 = vmatpush3.bf16.msra.mxu0 %v820_v57 }
 0x203   :  { %764 = vmatprep.subr.bf16.mxu0 %v929_v0 }
 0x206   :  { %765 = vmatpush3.bf16.msra.mxu0 %v821_v58 }
 0x207   :  { %766 = vmatprep.subr.bf16.mxu0 %v929_v0 }
 0x20a   :  { %767 = vmatpush3.bf16.msra.mxu0 %v822_v59 }
 0x20b   :  { %768 = vmatprep.subr.bf16.mxu0 %v929_v0 }
 0x20e   :  { %769 = vmatpush3.bf16.msra.mxu0 %v823_v60 }
 0x20f   :  { %770 = vmatprep.subr.bf16.mxu0 %v929_v0 }
 0x212   :  { %771 = vmatpush3.bf16.msra.mxu0 %v824_v61 }
 0x213   :  { %772 = vmatprep.subr.bf16.mxu0 %v929_v0 }
 0x216   :  { %773 = vmatpush3.bf16.msra.mxu0 %v825_v62 }
 0x217   :  { %774 = vmatprep.subr.bf16.mxu0 %v929_v0 }
 0x21a   :  { %775 = vmatpush3.bf16.msra.mxu0 %v826_v11 }
 0x21b   :  { %776 = vmatprep.subr.bf16.mxu0 %v929_v0  ;;  %v502_v0 = vrot.slane %v1020_v25, %v501_v26 }
 0x21e   :  { %777 = vmatpush3.bf16.msra.mxu0 %v827_v12 }
 0x2d4   :  { %v359_v2 = vpop.f32.mrb[4].mxu0 }
 0x2d5   :  { %v360_v3 = vadd.f32 %v359_v2, %v276_v1  ;;  %v740_v4 = vpop.f32.mrb[5].mxu0 }
 0x2d6   :  { %v362_v5 = vpop.f32.mrb[6].mxu0 }
 0x2d7   :  { %v363_v6 = vadd.f32 %v362_v5, %v276_v1  ;;  %v741_v7 = vpop.f32.mrb[7].mxu0  ;;  %v366_v8 = vmax.f32 %v360_v3, 0.0 }
 0x2d9   :  { %v367_v9 = vmax.f32 %v363_v6, 0.0 }
 0x2db   :  { %v368_v10 = vpack.c.bf16 %v367_v9, %v366_v8 }
 0x2dd   :  { %759 = vmatmul.mubr.bf16.vlgmr.msra.gmra.mrb[4].mxu1 %v368_v10 }
 0x3b0   :  { %v472_v15 = vpop.f32.mrb[4].mxu1 }
 0x3b1   :  { %v473_v16 = vadd.f32 %v472_v15, %v389_v14  ;;  %v760_v17 = vpop.f32.mrb[5].mxu1 }
 0x3b2   :  { %v475_v18 = vpop.f32.mrb[6].mxu1 }
 0x3b3   :  { %v476_v19 = vadd.f32 %v475_v18, %v389_v14  ;;  %v761_v20 = vpop.f32.mrb[7].mxu1  ;;  %v479_v21 = vmax.f32 %v473_v16, 0.0 }
 0x3b5   :  { %v480_v22 = vmax.f32 %v476_v19, 0.0 }
 0x3b7   :  { %v481_v24 = vpack.c.bf16 %v480_v22, %v479_v21 }
 0x3b9   :  { %779 = vmatmul.mubr.bf16.vlgmr.msra.gmra.mrb[8].mxu0 %v481_v24 }
 0x48c   :  { %v585_v27 = vpop.f32.mrb[8].mxu0 }
 0x48d   :  { %v586_v28 = vadd.f32 %v585_v27, %v502_v0  ;;  %v780_v29 = vpop.f32.mrb[9].mxu0 }
 0x48e   :  { %v588_v30 = vpop.f32.mrb[10].mxu0 }
 0x48f   :  { %592 = vst [vmem:[#allocation8] sm:$0xff] %v586_v28  ;;  %v589_v31 = vadd.f32 %v588_v30, %v502_v0  ;;  %v781_v32 = vpop.f32.mrb[11].mxu0 }
 0x491   :  { %593 = vst [vmem:[#allocation8 + $0x8] sm:$0xff] %v589_v31 }
 0x492   :  { %905 = shalt.err (!%p902_p0)
}
 0x493   :  { %s906_s27 = scalar_lea.hbm %s1069_s3, 256 }
 0x494   :  { %p907_p1 = scmp.ne.s32.totalorder %s1069_s3, %s906_s27  ;;  %p910_p2 = scmp.lt.u32.totalorder %s906_s27, %s1069_s3 }
 0x496   :  { %p912_p3 = pnand %p910_p2, %p907_p1 }
 0x498   :  { %915 = shalt.err (!%p912_p3)
}
 0x499   :  { %605 = dma.vmem_to_hbm [thread:$0]  %s600_s23, 256, %s1069_s3, [#allocation4], %s926_s1, %s926_s1, %s927_s9  }
 0x49a   :  { %920 = dma.done.wait [#allocation4], 256  }
 0x49b   :  { %921 = vsyncadd [#allocation4], 4294967040 }
 0x49c   :  { %609 = vsyncpa [#allocation3], 1 }
 0x49d   :  { %610 = vsyncpa [#allocation6], 1 }
 0x49e   :  { %611 = vsyncpa [#allocation4], 1 }

</bundles_post_ra>
